<compile_context>
chip_gen: v6e
topology: v6e:2x2x1
jax: 0.10.0
libtpu: 0.0.40
codegen_flags: <defaults>
</compile_context>

<pallas_src>
import jax
import jax.numpy as jnp
from jax.experimental import pallas as pl
from jax.experimental.pallas import tpu as pltpu

_LANES = 128
_SUBLANES = 8


def _copy_kernel(x_ref, o_ref):
    # Pure pass-through of the current lane-dense tile.
    o_ref[...] = x_ref[...]


def _identity_copy(x, *, max_block_rows=4096):
    """Materialized identity copy of x through a lane-dense Pallas kernel.

    Only used when the caller explicitly needs a fresh buffer; the default
    NoInterSetLayer path returns x without any device copy.
    """
    orig_shape, orig_dtype = x.shape, x.dtype

    # Flatten and pad to a multiple of (8 sublanes x 128 lanes) so the copy
    # is fully lane-dense (unmasked full-width stores) regardless of C.
    flat = x.reshape(-1)
    n = flat.shape[0]
    chunk = _LANES * _SUBLANES
    padded = pl.cdiv(n, chunk) * chunk
    if padded != n:
        flat = jnp.pad(flat, (0, padded - n))
    rows = padded // _LANES
    x2d = flat.reshape(rows, _LANES)

    # Largest block that comfortably fits double-buffered in+out on every
    # generation (4096 x 128 x 4B = 2 MiB per block -> ~8 MiB total, far
    # under even v7x's 32 MiB scoped / 64 MiB physical VMEM). Small inputs
    # collapse to a single block => grid=(1,), one DMA in / one DMA out.
    block_rows = min(rows, max_block_rows)
    grid = (pl.cdiv(rows, block_rows),)

    out2d = pl.pallas_call(
        _copy_kernel,
        out_shape=jax.ShapeDtypeStruct((rows, _LANES), orig_dtype),
        grid_spec=pltpu.PrefetchScalarGridSpec(
            num_scalar_prefetch=0,
            grid=grid,
            in_specs=[pl.BlockSpec((block_rows, _LANES), lambda i: (i, 0))],
            out_specs=pl.BlockSpec((block_rows, _LANES), lambda i: (i, 0)),
        ),
        # Let XLA donate x2d's buffer where legal -> no second HBM writeback.
        input_output_aliases={0: 0},
        compiler_params=pltpu.CompilerParams(
            dimension_semantics=("parallel",),  # shards rows over v7x's 2 TCs
        ),
    )(x2d)

    out_flat = out2d.reshape(-1)
    if padded != n:
        out_flat = out_flat[:n]
    return out_flat.reshape(orig_shape)


def no_inter_set_layer(inputs, *, materialize=False):
    """Pallas/JAX implementation of NoInterSetLayer.forward.

    inputs: tuple (x, x_knn, knn_idx, p_r). Returns x.

    Default (materialize=False): returns x directly — the module is a no-op
    on x, so no kernel / no HBM traffic (highest-value optimization).
    materialize=True: returns a fresh copy of x via the optimized Pallas
    identity kernel (for callers needing an independent buffer).
    """
    x, x_knn, knn_idx, p_r = inputs  # glue: other tensors unused, as in PyTorch
    if not materialize:
        return x
    return _identity_copy(x)


if __name__ == "__main__":
    key = jax.random.PRNGKey(0)
    k1, k2, k3, k4 = jax.random.split(key, 4)

    n = 64          # number of points
    c = 32          # feature channels (in_planes)
    nsample = 16    # matches module default

    x = jax.random.normal(k1, (n, c), dtype=jnp.float32)
    x_knn = jax.random.normal(k2, (n, nsample, c), dtype=jnp.float32)
    knn_idx = jax.random.randint(k3, (n, nsample), 0, n, dtype=jnp.int32)
    p_r = jax.random.normal(k4, (n, nsample, 3), dtype=jnp.float32)

    # Fast path: exact module semantics, zero-cost passthrough.
    out_fast = no_inter_set_layer((x, x_knn, knn_idx, p_r))
    out_fast = jax.block_until_ready(out_fast)
    assert out_fast.shape == x.shape and out_fast.dtype == x.dtype
    assert bool(jnp.array_equal(out_fast, x))

    # Materialized path: exercise the Pallas kernel once and verify identity.
    out_copy = no_inter_set_layer((x, x_knn, knn_idx, p_r), materialize=True)
    out_copy = jax.block_until_ready(out_copy)
    assert out_copy.shape == x.shape and out_copy.dtype == x.dtype
    assert bool(jnp.array_equal(out_copy, x))

    print("KERNEL_OK")
</pallas_src>

<mosaic_0001>
module attributes {stable_mosaic.version = 11 : i64} {
  func.func @_copy_kernel(%arg0: i32, %arg1: memref<16x128xf32, #tpu.memory_space<vmem>>, %arg2: memref<16x128xf32, #tpu.memory_space<vmem>>) attributes {dimension_semantics = [#tpu.dimension_semantics<parallel>], iteration_bounds = array<i64: 1>, scalar_prefetch = 0 : i64, scratch_operands = 0 : i64, tpu.core_type = #tpu.core_type<tc>, window_params = [{transform_indices = @transform_0, window_bounds = array<i64: 16, 128>}, {transform_indices = @transform_1, window_bounds = array<i64: 16, 128>}]} {
    %c0 = arith.constant 0 : index
    %c0_0 = arith.constant 0 : index
    %0 = vector.load %arg1[%c0, %c0_0] : memref<16x128xf32, #tpu.memory_space<vmem>>, vector<16x128xf32>
    %c0_1 = arith.constant 0 : index
    %c0_2 = arith.constant 0 : index
    %1 = vector.load %arg2[%c0_1, %c0_2] : memref<16x128xf32, #tpu.memory_space<vmem>>, vector<16x128xf32>
    tpu.vector_store %arg2[%c0_1, %c0_2], %0 {strides = array<i32>} : memref<16x128xf32, #tpu.memory_space<vmem>>, vector<16x128xf32>,
    return
  }
  func.func @transform_0(%arg0: i32) -> (i32, i32) {
    %c0_i32 = arith.constant 0 : i32
    %c0_i32_0 = arith.constant 0 : i32
    return %arg0, %c0_i32 : i32, i32
  }
  func.func @transform_1(%arg0: i32) -> (i32, i32) {
    %c0_i32 = arith.constant 0 : i32
    %c0_i32_0 = arith.constant 0 : i32
    return %arg0, %c0_i32 : i32, i32
  }
}

</mosaic_0001>

<bundles_post_ra>
// kernel: tpu_custom_call.1
= control target key start
LH: loop header
LB: loop body
LE: loop exit
PB: predicated region body
PF: predicated region fallthrough
CT: control target
= control target key end

     0   :  { %6 = vsyncpa [#allocation3], 0  ;;  %s112_s0 = inlined_call_operand.hbm [shape: f32[16,128], index: 0, kind: input, shape index: {}, may-alias: {0,1}]   ;;  %s113_s1 = inlined_call_operand.hbm [shape: f32[16,128], index: 1, kind: output, shape index: {}, may-alias: {0,1}]  }
   0x1   :  { %7 = vsyncpa [#allocation4], 0  ;;  %s92_s6 = smov [#allocation2]  }
   0x2   :  { %s13_s7 = sshll.u32 %s92_s6, 4  ;;  %s14_s7 = int_to_ptr.vmem [resolvable:$true] %s13_s7 }
   0x3   :  { %s56_s8 = scalar_lea.vmem %s14_s7, 256  ;;  %p61_p1 = scmp.lt.s32.totalorder %s14_s7, %s14_s7 }
   0x4   :  { %p57_p0 = scmp.ne.s32.totalorder %s14_s7, %s56_s8  ;;  %p62_p2 = scmp.lt.s32.totalorder %s56_s8, %s56_s8 }
   0x6   :  { %p63_p3 = por %p62_p2, %p61_p1 }
   0x8   :  { %p64_p4 = pnand %p63_p3, %p57_p0 }
   0xa   :  { %67 = shalt.err (!%p64_p4)
}
   0xb   :  { %s93_s9 = smov 128   ;;  %s94_s10 = smov 8  }
   0xc   :  { %19 = dma.hbm_to_vmem [thread:$0]  %s112_s0, 256, %s14_s7, [#allocation3], %s93_s9, %s93_s9, %s94_s10  }
   0xd   :  { %88 = dma.done.wait [#allocation3], 256  }
   0xe   :  { %89 = vsyncadd [#allocation3], 4294967040  ;;  %s95_s13 = smov [#allocation5]   ;;  %v23_v0 = vld [vmem:[#allocation2] sm:$0xff]  ;;  %v24_v1 = vld [vmem:[#allocation2 + $0x8] sm:$0xff] }
   0xf   :  { %s32_s14 = sshll.u32 %s95_s13, 4  ;;  %25 = vst [vmem:[#allocation5] sm:$0xff] %v23_v0  ;;  %26 = vst [vmem:[#allocation5 + $0x8] sm:$0xff] %v24_v1  ;;  %s33_s14 = int_to_ptr.vmem [resolvable:$true] %s32_s14 }
  0x10   :  { %s68_s15 = scalar_lea.vmem %s33_s14, 256  ;;  %p73_p6 = scmp.lt.s32.totalorder %s33_s14, %s33_s14 }
  0x11   :  { %p69_p5 = scmp.ne.s32.totalorder %s33_s14, %s68_s15  ;;  %p74_p7 = scmp.lt.s32.totalorder %s68_s15, %s68_s15 }
  0x13   :  { %p75_p8 = por %p74_p7, %p73_p6 }
  0x15   :  { %p76_p9 = pnand %p75_p8, %p69_p5 }
  0x17   :  { %79 = shalt.err (!%p76_p9)
}
  0x18   :  { %38 = dma.vmem_to_hbm [thread:$0]  %s33_s14, 256, %s113_s1, [#allocation4], %s93_s9, %s93_s9, %s94_s10  }
  0x19   :  { %90 = dma.done.wait [#allocation4], 256  }
  0x1a   :  { %91 = vsyncadd [#allocation4], 4294967040 }
  0x1b   :  { %42 = vsyncpa [#allocation3], 1 }
  0x1c   :  { %43 = vsyncpa [#allocation4], 1 }

</bundles_post_ra>
